<compile_context>
chip_gen: v7x
topology: tpu7x:2x2x1
jax: 0.10.0
libtpu: 0.0.40
codegen_flags: <defaults>
</compile_context>

<pallas_src>
import functools
import math

import jax
import jax.numpy as jnp
import numpy as np
from jax.experimental import pallas as pl
from jax.experimental.pallas import tpu as pltpu


# ----------------------------- Pallas kernel --------------------------------
def unflatten_copy_kernel(x_ref, o_ref):
    # Single unmasked lane-dense pass; with input/output aliased this writes
    # back into the very buffer the data came from (no new HBM allocation).
    o_ref[...] = x_ref[...]


# ------------------------------ host wrapper ---------------------------------
@functools.partial(jax.jit, static_argnames=("size",))
def unflatten_forward(x, size):
    """Pallas equivalent of UnFlatten(size): x.view(B, size, 1, 19)."""
    B = x.shape[0]
    feat = math.prod(x.shape[1:])
    assert feat == size * 1 * 19, (
        f"UnFlatten: per-batch elements {feat} != size*1*19 = {size * 19}"
    )

    # Lane-dense presentation at the pallas_call boundary: (B, size*19).
    # For contiguous data this reshape is free (same semantics as .view).
    x_flat = x.reshape(B, feat)

    y_flat = pl.pallas_call(
        unflatten_copy_kernel,
        out_shape=jax.ShapeDtypeStruct((B, feat), x.dtype),
        # Whole-array VMEM blocks, no grid: removes all grid/pipeline setup.
        in_specs=[pl.BlockSpec(memory_space=pltpu.MemorySpace.VMEM)],
        out_specs=pl.BlockSpec(memory_space=pltpu.MemorySpace.VMEM),
        # Output buffer IS the input buffer (matches torch .view: no new HBM).
        input_output_aliases={0: 0},
        # Advertise the call as trivial so XLA doesn't schedule around it.
        cost_estimate=pl.CostEstimate(
            flops=0,
            transcendentals=0,
            bytes_accessed=2 * B * feat * x.dtype.itemsize,
        ),
    )(x_flat)

    # The actual "view": free metadata reshape in the wrapper.
    return y_flat.reshape(B, size, 1, 19)


# ------------------------------ pure reference --------------------------------
def unflatten_reference(x, size):
    return x.reshape(x.shape[0], size, 1, 19)


# ------------------------------------ main ------------------------------------
if __name__ == "__main__":
    key = jax.random.PRNGKey(0)

    B = 2          # batch
    SIZE = 32      # self.size in the module -> per-batch features = 32*1*19

    # Typical input to UnFlatten in the GAE decoder: a flat latent vector.
    x = jax.random.normal(key, (B, SIZE * 19), jnp.float32)

    # Reference computed first (host copy) so aliasing/donation can't bite.
    ref = np.asarray(unflatten_reference(x, SIZE))

    out = unflatten_forward(x, SIZE)
    out = jax.block_until_ready(out)

    assert out.shape == (B, SIZE, 1, 19), out.shape
    assert out.dtype == x.dtype
    np.testing.assert_allclose(np.asarray(out), ref, rtol=0, atol=0)

    print("KERNEL_OK")
</pallas_src>

<mosaic_0001>
module attributes {stable_mosaic.version = 11 : i64} {
  func.func @unflatten_copy_kernel(%arg0: memref<2x608xf32, #tpu.memory_space<vmem>>, %arg1: memref<2x608xf32, #tpu.memory_space<vmem>>) attributes {dimension_semantics = [], scalar_prefetch = 0 : i64, scratch_operands = 0 : i64, tpu.core_type = #tpu.core_type<tc>} {
    %c0 = arith.constant 0 : index
    %c0_0 = arith.constant 0 : index
    %0 = vector.load %arg0[%c0, %c0_0] : memref<2x608xf32, #tpu.memory_space<vmem>>, vector<2x608xf32>
    %c0_1 = arith.constant 0 : index
    %c0_2 = arith.constant 0 : index
    %1 = vector.load %arg1[%c0_1, %c0_2] : memref<2x608xf32, #tpu.memory_space<vmem>>, vector<2x608xf32>
    tpu.vector_store %arg1[%c0_1, %c0_2], %0 {strides = array<i32>} : memref<2x608xf32, #tpu.memory_space<vmem>>, vector<2x608xf32>,
    return
  }
}

</mosaic_0001>

<bundles_post_ra>
// kernel: unflatten_forward.1
= control target key start
LH: loop header
LB: loop body
LE: loop exit
PB: predicated region body
PF: predicated region fallthrough
CT: control target
= control target key end

     0   :  { %vm11_vm0 = vcmask 779264   ;;  %s39_s0 = inlined_call_operand.vmem [shape: f32[2,608], index: 0, kind: input, shape index: {}, may-alias: {0,1}]   ;;  %s40_s1 = inlined_call_operand.vmem [shape: f32[2,608], index: 1, kind: output, shape index: {}, may-alias: {0,1}]  }
   0x1   :  { %v8_v0 = vld [vmem:[%s39_s0] sm:$0xff]  ;;  %v9_v1 = vld [vmem:[%s39_s0 + $0x8] sm:$0x3] }
   0x2   :  { %10 = vst [vmem:[%s40_s1] sm:$0xff] %v8_v0  ;;  %12 = vst.msk [vmem:[%s40_s1 + $0x8] sm:$0x3] %vm11_vm0, %v9_v1 }

</bundles_post_ra>
